<compile_context>
chip_gen: v5e
topology: v5e:2x2
jax: 0.10.0
libtpu: 0.0.40
codegen_flags: <defaults>
</compile_context>

<pallas_src>
import functools

import jax
import jax.numpy as jnp
from jax.experimental import pallas as pl
from jax.experimental.pallas import tpu as pltpu


LN_EPS = 1e-5  # PyTorch nn.LayerNorm default


def _round_up(n, m):
    return ((n + m - 1) // m) * m


def _layernorm(h, gamma, beta):
    # PyTorch LayerNorm: biased variance over the last dim.
    mu = jnp.mean(h, axis=-1, keepdims=True)
    c = h - mu
    var = jnp.mean(c * c, axis=-1, keepdims=True)
    return c * jax.lax.rsqrt(var + LN_EPS) * gamma + beta


# ---------------------------------------------------------------------------
# Kernel
# ---------------------------------------------------------------------------
def dueling_kernel(x_ref, w1_ref, w2_ref, wsa_ref, aw2_ref, p_ref, out_ref,
                   *, hidden, h2, action_dim):
    x = x_ref[...]
    if x.dtype != jnp.float32:          # conditional cast (no-op for f32 input)
        x = x.astype(jnp.float32)

    # ---- packed parameter slab: hoist each row once per grid step ----------
    b1    = p_ref[0:1,  :hidden]
    g1    = p_ref[1:2,  :hidden]
    be1   = p_ref[2:3,  :hidden]
    b2    = p_ref[3:4,  :hidden]
    g2    = p_ref[4:5,  :hidden]
    be2   = p_ref[5:6,  :hidden]
    b_sa  = p_ref[6:7,  :2 * h2]
    g_sa  = p_ref[7:8,  :2 * h2]
    be_sa = p_ref[8:9,  :2 * h2]
    vw2r  = p_ref[9:10, :h2]            # value-head weight as a row vector
    ab2   = p_ref[10:11, :action_dim]
    vb2   = p_ref[11:12, 0:1]

    # ---- trunk: fc1 -> ln1 -> relu, fc2 -> ln2 -> relu (dropout = identity) -
    h1 = jnp.dot(x, w1_ref[...], preferred_element_type=jnp.float32) + b1
    h1 = jnp.maximum(_layernorm(h1, g1, be1), 0.0)

    t2 = jnp.dot(h1, w2_ref[...], preferred_element_type=jnp.float32) + b2
    t2 = jnp.maximum(_layernorm(t2, g2, be2), 0.0)

    features = t2 + h1                  # residual connection

    # ---- fused (value | advantage) first layer: ONE MXU pass ---------------
    sa = jnp.dot(features, wsa_ref[...], preferred_element_type=jnp.float32) + b_sa
    v = jnp.maximum(_layernorm(sa[:, :h2], g_sa[:, :h2], be_sa[:, :h2]), 0.0)
    a = jnp.maximum(_layernorm(sa[:, h2:], g_sa[:, h2:], be_sa[:, h2:]), 0.0)

    # ---- value head: [B,h2]x[h2,1] done on the VPU, not the MXU ------------
    value = jnp.sum(v * vw2r, axis=-1, keepdims=True) + vb2        # [B, 1]

    # ---- advantage head -----------------------------------------------------
    advantage = jnp.dot(a, aw2_ref[...],
                        preferred_element_type=jnp.float32) + ab2  # [B, A]

    # ---- dueling combine: Q = V + (A - mean_a(A)) ---------------------------
    adv_mean = jnp.mean(advantage, axis=-1, keepdims=True)
    out_ref[...] = (value + (advantage - adv_mean)).astype(out_ref.dtype)


# ---------------------------------------------------------------------------
# Wrapper
# ---------------------------------------------------------------------------
def dueling_forward(x, packed, *, tile_b=128):
    """x: [B, state_dim] float32.  packed: dict from pack_params()."""
    B, state_dim = x.shape
    w1, w2, w_sa, aw2, pvec = (packed["w1"], packed["w2"], packed["w_sa"],
                               packed["aw2"], packed["pvec"])
    hidden = w1.shape[1]
    h2 = aw2.shape[0]
    action_dim = aw2.shape[1]

    # batch tile: multiple of 8 (sublane), at most `tile_b`
    tb = min(tile_b, _round_up(B, 8))
    Bp = _round_up(B, tb)
    if Bp != B:
        x = jnp.pad(x, ((0, Bp - B), (0, 0)))

    kernel = functools.partial(dueling_kernel,
                               hidden=hidden, h2=h2, action_dim=action_dim)

    out = pl.pallas_call(
        kernel,
        out_shape=jax.ShapeDtypeStruct((Bp, action_dim), jnp.float32),
        grid=(Bp // tb,),
        in_specs=[
            pl.BlockSpec((tb, state_dim), lambda i: (i, 0)),   # x: batch-tiled
            pl.BlockSpec(w1.shape,   lambda i: (0, 0)),        # weights resident
            pl.BlockSpec(w2.shape,   lambda i: (0, 0)),
            pl.BlockSpec(w_sa.shape, lambda i: (0, 0)),
            pl.BlockSpec(aw2.shape,  lambda i: (0, 0)),
            pl.BlockSpec(pvec.shape, lambda i: (0, 0)),        # packed bias/LN slab
        ],
        out_specs=pl.BlockSpec((tb, action_dim), lambda i: (i, 0)),
        compiler_params=pltpu.CompilerParams(
            dimension_semantics=("parallel",)),                # megacore on v7x
    )(x, w1, w2, w_sa, aw2, pvec)

    return out[:B] if Bp != B else out


# ---------------------------------------------------------------------------
# Parameters (synthetic, deterministic) + packing
# ---------------------------------------------------------------------------
def init_raw_params(key, state_dim, hidden_dim, action_dim):
    """PyTorch-equivalent params; Linear weights stored as [in, out]."""
    h2 = hidden_dim // 2
    keys = jax.random.split(key, 12)

    def lin(kw, kb, fan_in, fan_out):
        bound = 1.0 / jnp.sqrt(fan_in)
        w = jax.random.uniform(kw, (fan_in, fan_out), jnp.float32, -bound, bound)
        b = jax.random.uniform(kb, (1, fan_out), jnp.float32, -bound, bound)
        return w, b

    w1, b1 = lin(keys[0], keys[1], state_dim, hidden_dim)
    w2, b2 = lin(keys[2], keys[3], hidden_dim, hidden_dim)
    vw1, vb1 = lin(keys[4], keys[5], hidden_dim, h2)
    vw2, vb2 = lin(keys[6], keys[7], h2, 1)
    aw1, ab1 = lin(keys[8], keys[9], hidden_dim, h2)
    aw2, ab2 = lin(keys[10], keys[11], h2, action_dim)

    ones = lambda n: jnp.ones((1, n), jnp.float32)
    zeros = lambda n: jnp.zeros((1, n), jnp.float32)

    return dict(
        w1=w1, b1=b1, g1=ones(hidden_dim), be1=zeros(hidden_dim),
        w2=w2, b2=b2, g2=ones(hidden_dim), be2=zeros(hidden_dim),
        vw1=vw1, vb1=vb1, vg1=ones(h2), vbe1=zeros(h2),
        vw2=vw2, vb2=vb2,
        aw1=aw1, ab1=ab1, ag1=ones(h2), abe1=zeros(h2),
        aw2=aw2, ab2=ab2,
    )


def pack_params(p, hidden_dim, action_dim, weight_dtype=jnp.float32):
    """Consolidate 20 small tensors into 4 weight slabs + one vector slab.

    On v6e/v7x, pass weight_dtype=jnp.bfloat16 to halve weight DMA bytes
    (MXU accumulates in f32 via preferred_element_type).
    """
    h2 = hidden_dim // 2
    maxw = max(hidden_dim, 2 * h2, action_dim)

    def row(v):
        v = jnp.reshape(v, (-1,))
        return jnp.pad(v, (0, maxw - v.shape[0]))[None, :]

    pvec = jnp.concatenate([
        row(p["b1"]), row(p["g1"]), row(p["be1"]),
        row(p["b2"]), row(p["g2"]), row(p["be2"]),
        row(jnp.concatenate([p["vb1"].ravel(), p["ab1"].ravel()])),
        row(jnp.concatenate([p["vg1"].ravel(), p["ag1"].ravel()])),
        row(jnp.concatenate([p["vbe1"].ravel(), p["abe1"].ravel()])),
        row(p["vw2"]),          # [h2, 1] -> row of length h2
        row(p["ab2"]),
        row(p["vb2"]),
    ], axis=0).astype(jnp.float32)

    w_sa = jnp.concatenate([p["vw1"], p["aw1"]], axis=1)   # [hidden, 2*h2]

    return dict(
        w1=p["w1"].astype(weight_dtype),
        w2=p["w2"].astype(weight_dtype),
        w_sa=w_sa.astype(weight_dtype),
        aw2=p["aw2"].astype(weight_dtype),
        pvec=pvec,
    )


# ---------------------------------------------------------------------------
# Plain-JAX reference (eval-mode dropout = identity)
# ---------------------------------------------------------------------------
def reference_forward(x, p):
    ln = lambda h, g, b: (h - h.mean(-1, keepdims=True)) * jax.lax.rsqrt(
        ((h - h.mean(-1, keepdims=True)) ** 2).mean(-1, keepdims=True) + LN_EPS) * g + b
    h1 = jnp.maximum(ln(x @ p["w1"] + p["b1"], p["g1"], p["be1"]), 0.0)
    h2 = jnp.maximum(ln(h1 @ p["w2"] + p["b2"], p["g2"], p["be2"]), 0.0)
    f = h2 + h1
    v = jnp.maximum(ln(f @ p["vw1"] + p["vb1"], p["vg1"], p["vbe1"]), 0.0)
    value = v @ p["vw2"] + p["vb2"]
    a = jnp.maximum(ln(f @ p["aw1"] + p["ab1"], p["ag1"], p["abe1"]), 0.0)
    adv = a @ p["aw2"] + p["ab2"]
    return value + (adv - adv.mean(-1, keepdims=True))


if __name__ == "__main__":
    B, STATE_DIM, HIDDEN_DIM, ACTION_DIM = 8, 16, 32, 8

    key = jax.random.PRNGKey(0)
    k_x, k_p = jax.random.split(key)
    x = jax.random.normal(k_x, (B, STATE_DIM), jnp.float32)

    raw = init_raw_params(k_p, STATE_DIM, HIDDEN_DIM, ACTION_DIM)
    packed = pack_params(raw, HIDDEN_DIM, ACTION_DIM)

    # single-tile run (grid = 1)
    qvals = jax.block_until_ready(dueling_forward(x, packed))
    ref = reference_forward(x, raw)
    assert qvals.shape == (B, ACTION_DIM)
    assert jnp.allclose(qvals, ref, atol=1e-4, rtol=1e-4), "mismatch vs reference"

    # multi-step batch grid + padding path (grid = 3, last tile partially padded)
    B2 = 20
    x2 = jax.random.normal(jax.random.PRNGKey(1), (B2, STATE_DIM), jnp.float32)
    q2 = jax.block_until_ready(dueling_forward(x2, packed, tile_b=8))
    ref2 = reference_forward(x2, raw)
    assert q2.shape == (B2, ACTION_DIM)
    assert jnp.allclose(q2, ref2, atol=1e-4, rtol=1e-4), "mismatch vs reference (gridded)"

    print("KERNEL_OK")
</pallas_src>

<mosaic_0001>
module attributes {stable_mosaic.version = 11 : i64} {
  func.func @dueling_kernel(%arg0: i32, %arg1: memref<8x16xf32, #tpu.memory_space<vmem>>, %arg2: memref<16x32xf32, #tpu.memory_space<vmem>>, %arg3: memref<32x32xf32, #tpu.memory_space<vmem>>, %arg4: memref<32x32xf32, #tpu.memory_space<vmem>>, %arg5: memref<16x8xf32, #tpu.memory_space<vmem>>, %arg6: memref<12x32xf32, #tpu.memory_space<vmem>>, %arg7: memref<8x8xf32, #tpu.memory_space<vmem>>) attributes {dimension_semantics = [#tpu.dimension_semantics<parallel>], iteration_bounds = array<i64: 1>, scalar_prefetch = 0 : i64, scratch_operands = 0 : i64, tpu.core_type = #tpu.core_type<tc>, window_params = [{transform_indices = @transform_0, window_bounds = array<i64: 8, 16>}, {pipeline_mode = #tpu.pipeline_mode<synchronous>, transform_indices = @transform_1, window_bounds = array<i64: 16, 32>}, {pipeline_mode = #tpu.pipeline_mode<synchronous>, transform_indices = @transform_2, window_bounds = array<i64: 32, 32>}, {pipeline_mode = #tpu.pipeline_mode<synchronous>, transform_indices = @transform_3, window_bounds = array<i64: 32, 32>}, {pipeline_mode = #tpu.pipeline_mode<synchronous>, transform_indices = @transform_4, window_bounds = array<i64: 16, 8>}, {pipeline_mode = #tpu.pipeline_mode<synchronous>, transform_indices = @transform_5, window_bounds = array<i64: 12, 32>}, {transform_indices = @transform_6, window_bounds = array<i64: 8, 8>}]} {
    %c0 = arith.constant 0 : index
    %c0_0 = arith.constant 0 : index
    %0 = vector.load %arg1[%c0, %c0_0] : memref<8x16xf32, #tpu.memory_space<vmem>>, vector<8x16xf32>
    %c0_1 = arith.constant 0 : index
    %c0_2 = arith.constant 0 : index
    %1 = vector.load %arg6[%c0_1, %c0_2] : memref<12x32xf32, #tpu.memory_space<vmem>>, vector<1x32xf32>
    %c1 = arith.constant 1 : index
    %c0_3 = arith.constant 0 : index
    %2 = vector.load %arg6[%c1, %c0_3] : memref<12x32xf32, #tpu.memory_space<vmem>>, vector<1x32xf32>
    %c2 = arith.constant 2 : index
    %c0_4 = arith.constant 0 : index
    %3 = vector.load %arg6[%c2, %c0_4] : memref<12x32xf32, #tpu.memory_space<vmem>>, vector<1x32xf32>
    %c3 = arith.constant 3 : index
    %c0_5 = arith.constant 0 : index
    %4 = vector.load %arg6[%c3, %c0_5] : memref<12x32xf32, #tpu.memory_space<vmem>>, vector<1x32xf32>
    %c4 = arith.constant 4 : index
    %c0_6 = arith.constant 0 : index
    %5 = vector.load %arg6[%c4, %c0_6] : memref<12x32xf32, #tpu.memory_space<vmem>>, vector<1x32xf32>
    %c5 = arith.constant 5 : index
    %c0_7 = arith.constant 0 : index
    %6 = vector.load %arg6[%c5, %c0_7] : memref<12x32xf32, #tpu.memory_space<vmem>>, vector<1x32xf32>
    %c6 = arith.constant 6 : index
    %c0_8 = arith.constant 0 : index
    %7 = vector.load %arg6[%c6, %c0_8] : memref<12x32xf32, #tpu.memory_space<vmem>>, vector<1x32xf32>
    %c7 = arith.constant 7 : index
    %c0_9 = arith.constant 0 : index
    %8 = vector.load %arg6[%c7, %c0_9] : memref<12x32xf32, #tpu.memory_space<vmem>>, vector<1x32xf32>
    %c8 = arith.constant 8 : index
    %c0_10 = arith.constant 0 : index
    %9 = vector.load %arg6[%c8, %c0_10] : memref<12x32xf32, #tpu.memory_space<vmem>>, vector<1x32xf32>
    %c9 = arith.constant 9 : index
    %c0_11 = arith.constant 0 : index
    %10 = vector.load %arg6[%c9, %c0_11] : memref<12x32xf32, #tpu.memory_space<vmem>>, vector<1x16xf32>
    %c10 = arith.constant 10 : index
    %c0_12 = arith.constant 0 : index
    %11 = vector.load %arg6[%c10, %c0_12] : memref<12x32xf32, #tpu.memory_space<vmem>>, vector<1x8xf32>
    %c11 = arith.constant 11 : index
    %c0_13 = arith.constant 0 : index
    %12 = vector.load %arg6[%c11, %c0_13] : memref<12x32xf32, #tpu.memory_space<vmem>>, vector<1x1xf32>
    %c0_14 = arith.constant 0 : index
    %c0_15 = arith.constant 0 : index
    %13 = vector.load %arg2[%c0_14, %c0_15] : memref<16x32xf32, #tpu.memory_space<vmem>>, vector<16x32xf32>
    %cst = arith.constant dense<0.000000e+00> : vector<8x32xf32>
    %14 = tpu.matmul %0, %13, %cst {dimension_numbers = #tpu.dot_dimension_numbers<[1], [0], [0], [1], [0, 0, 1, 1], [], []>} : vector<8x16xf32>, vector<16x32xf32>, vector<8x32xf32> -> vector<8x32xf32>
    %15 = vector.broadcast %1 : vector<1x32xf32> to vector<8x32xf32>
    %16 = arith.addf %14, %15 : vector<8x32xf32>
    %cst_16 = arith.constant dense<0.000000e+00> : vector<8xf32>
    %17 = vector.multi_reduction <add>, %16, %cst_16 [1] : vector<8x32xf32> to vector<8xf32>
    %18 = vector.shape_cast %17 : vector<8xf32> to vector<8x1xf32>
    %cst_17 = arith.constant 3.200000e+01 : f32
    %19 = vector.broadcast %cst_17 : f32 to vector<8x1xf32>
    %20 = arith.divf %18, %19 : vector<8x1xf32>
    %21 = vector.broadcast %20 : vector<8x1xf32> to vector<8x32xf32>
    %22 = arith.subf %16, %21 : vector<8x32xf32>
    %23 = arith.mulf %22, %22 : vector<8x32xf32>
    %cst_18 = arith.constant dense<0.000000e+00> : vector<8xf32>
    %24 = vector.multi_reduction <add>, %23, %cst_18 [1] : vector<8x32xf32> to vector<8xf32>
    %25 = vector.shape_cast %24 : vector<8xf32> to vector<8x1xf32>
    %cst_19 = arith.constant 3.200000e+01 : f32
    %26 = vector.broadcast %cst_19 : f32 to vector<8x1xf32>
    %27 = arith.divf %25, %26 : vector<8x1xf32>
    %cst_20 = arith.constant 9.99999974E-6 : f32
    %28 = vector.broadcast %cst_20 : f32 to vector<8x1xf32>
    %29 = arith.addf %27, %28 : vector<8x1xf32>
    %30 = math.rsqrt %29 : vector<8x1xf32>
    %31 = vector.broadcast %30 : vector<8x1xf32> to vector<8x32xf32>
    %32 = arith.mulf %22, %31 : vector<8x32xf32>
    %33 = vector.broadcast %2 : vector<1x32xf32> to vector<8x32xf32>
    %34 = arith.mulf %32, %33 : vector<8x32xf32>
    %35 = vector.broadcast %3 : vector<1x32xf32> to vector<8x32xf32>
    %36 = arith.addf %34, %35 : vector<8x32xf32>
    %cst_21 = arith.constant 0.000000e+00 : f32
    %37 = vector.broadcast %cst_21 : f32 to vector<8x32xf32>
    %38 = arith.maximumf %36, %37 : vector<8x32xf32>
    %c0_22 = arith.constant 0 : index
    %c0_23 = arith.constant 0 : index
    %39 = vector.load %arg3[%c0_22, %c0_23] : memref<32x32xf32, #tpu.memory_space<vmem>>, vector<32x32xf32>
    %cst_24 = arith.constant dense<0.000000e+00> : vector<8x32xf32>
    %40 = tpu.matmul %38, %39, %cst_24 {dimension_numbers = #tpu.dot_dimension_numbers<[1], [0], [0], [1], [0, 0, 1, 1], [], []>} : vector<8x32xf32>, vector<32x32xf32>, vector<8x32xf32> -> vector<8x32xf32>
    %41 = vector.broadcast %4 : vector<1x32xf32> to vector<8x32xf32>
    %42 = arith.addf %40, %41 : vector<8x32xf32>
    %cst_25 = arith.constant dense<0.000000e+00> : vector<8xf32>
    %43 = vector.multi_reduction <add>, %42, %cst_25 [1] : vector<8x32xf32> to vector<8xf32>
    %44 = vector.shape_cast %43 : vector<8xf32> to vector<8x1xf32>
    %cst_26 = arith.constant 3.200000e+01 : f32
    %45 = vector.broadcast %cst_26 : f32 to vector<8x1xf32>
    %46 = arith.divf %44, %45 : vector<8x1xf32>
    %47 = vector.broadcast %46 : vector<8x1xf32> to vector<8x32xf32>
    %48 = arith.subf %42, %47 : vector<8x32xf32>
    %49 = arith.mulf %48, %48 : vector<8x32xf32>
    %cst_27 = arith.constant dense<0.000000e+00> : vector<8xf32>
    %50 = vector.multi_reduction <add>, %49, %cst_27 [1] : vector<8x32xf32> to vector<8xf32>
    %51 = vector.shape_cast %50 : vector<8xf32> to vector<8x1xf32>
    %cst_28 = arith.constant 3.200000e+01 : f32
    %52 = vector.broadcast %cst_28 : f32 to vector<8x1xf32>
    %53 = arith.divf %51, %52 : vector<8x1xf32>
    %cst_29 = arith.constant 9.99999974E-6 : f32
    %54 = vector.broadcast %cst_29 : f32 to vector<8x1xf32>
    %55 = arith.addf %53, %54 : vector<8x1xf32>
    %56 = math.rsqrt %55 : vector<8x1xf32>
    %57 = vector.broadcast %56 : vector<8x1xf32> to vector<8x32xf32>
    %58 = arith.mulf %48, %57 : vector<8x32xf32>
    %59 = vector.broadcast %5 : vector<1x32xf32> to vector<8x32xf32>
    %60 = arith.mulf %58, %59 : vector<8x32xf32>
    %61 = vector.broadcast %6 : vector<1x32xf32> to vector<8x32xf32>
    %62 = arith.addf %60, %61 : vector<8x32xf32>
    %cst_30 = arith.constant 0.000000e+00 : f32
    %63 = vector.broadcast %cst_30 : f32 to vector<8x32xf32>
    %64 = arith.maximumf %62, %63 : vector<8x32xf32>
    %65 = arith.addf %64, %38 : vector<8x32xf32>
    %c0_31 = arith.constant 0 : index
    %c0_32 = arith.constant 0 : index
    %66 = vector.load %arg4[%c0_31, %c0_32] : memref<32x32xf32, #tpu.memory_space<vmem>>, vector<32x32xf32>
    %cst_33 = arith.constant dense<0.000000e+00> : vector<8x32xf32>
    %67 = tpu.matmul %65, %66, %cst_33 {dimension_numbers = #tpu.dot_dimension_numbers<[1], [0], [0], [1], [0, 0, 1, 1], [], []>} : vector<8x32xf32>, vector<32x32xf32>, vector<8x32xf32> -> vector<8x32xf32>
    %68 = vector.broadcast %7 : vector<1x32xf32> to vector<8x32xf32>
    %69 = arith.addf %67, %68 : vector<8x32xf32>
    %70 = vector.extract_strided_slice %69 {offsets = [0, 0], sizes = [8, 16], strides = [1, 1]} : vector<8x32xf32> to vector<8x16xf32>
    %71 = vector.extract_strided_slice %8 {offsets = [0, 0], sizes = [1, 16], strides = [1, 1]} : vector<1x32xf32> to vector<1x16xf32>
    %72 = vector.extract_strided_slice %9 {offsets = [0, 0], sizes = [1, 16], strides = [1, 1]} : vector<1x32xf32> to vector<1x16xf32>
    %cst_34 = arith.constant dense<0.000000e+00> : vector<8xf32>
    %73 = vector.multi_reduction <add>, %70, %cst_34 [1] : vector<8x16xf32> to vector<8xf32>
    %74 = vector.shape_cast %73 : vector<8xf32> to vector<8x1xf32>
    %cst_35 = arith.constant 1.600000e+01 : f32
    %75 = vector.broadcast %cst_35 : f32 to vector<8x1xf32>
    %76 = arith.divf %74, %75 : vector<8x1xf32>
    %77 = vector.broadcast %76 : vector<8x1xf32> to vector<8x16xf32>
    %78 = arith.subf %70, %77 : vector<8x16xf32>
    %79 = arith.mulf %78, %78 : vector<8x16xf32>
    %cst_36 = arith.constant dense<0.000000e+00> : vector<8xf32>
    %80 = vector.multi_reduction <add>, %79, %cst_36 [1] : vector<8x16xf32> to vector<8xf32>
    %81 = vector.shape_cast %80 : vector<8xf32> to vector<8x1xf32>
    %cst_37 = arith.constant 1.600000e+01 : f32
    %82 = vector.broadcast %cst_37 : f32 to vector<8x1xf32>
    %83 = arith.divf %81, %82 : vector<8x1xf32>
    %cst_38 = arith.constant 9.99999974E-6 : f32
    %84 = vector.broadcast %cst_38 : f32 to vector<8x1xf32>
    %85 = arith.addf %83, %84 : vector<8x1xf32>
    %86 = math.rsqrt %85 : vector<8x1xf32>
    %87 = vector.broadcast %86 : vector<8x1xf32> to vector<8x16xf32>
    %88 = arith.mulf %78, %87 : vector<8x16xf32>
    %89 = vector.broadcast %71 : vector<1x16xf32> to vector<8x16xf32>
    %90 = arith.mulf %88, %89 : vector<8x16xf32>
    %91 = vector.broadcast %72 : vector<1x16xf32> to vector<8x16xf32>
    %92 = arith.addf %90, %91 : vector<8x16xf32>
    %cst_39 = arith.constant 0.000000e+00 : f32
    %93 = vector.broadcast %cst_39 : f32 to vector<8x16xf32>
    %94 = arith.maximumf %92, %93 : vector<8x16xf32>
    %95 = vector.extract_strided_slice %69 {offsets = [0, 16], sizes = [8, 16], strides = [1, 1]} : vector<8x32xf32> to vector<8x16xf32>
    %96 = vector.extract_strided_slice %8 {offsets = [0, 16], sizes = [1, 16], strides = [1, 1]} : vector<1x32xf32> to vector<1x16xf32>
    %97 = vector.extract_strided_slice %9 {offsets = [0, 16], sizes = [1, 16], strides = [1, 1]} : vector<1x32xf32> to vector<1x16xf32>
    %cst_40 = arith.constant dense<0.000000e+00> : vector<8xf32>
    %98 = vector.multi_reduction <add>, %95, %cst_40 [1] : vector<8x16xf32> to vector<8xf32>
    %99 = vector.shape_cast %98 : vector<8xf32> to vector<8x1xf32>
    %cst_41 = arith.constant 1.600000e+01 : f32
    %100 = vector.broadcast %cst_41 : f32 to vector<8x1xf32>
    %101 = arith.divf %99, %100 : vector<8x1xf32>
    %102 = vector.broadcast %101 : vector<8x1xf32> to vector<8x16xf32>
    %103 = arith.subf %95, %102 : vector<8x16xf32>
    %104 = arith.mulf %103, %103 : vector<8x16xf32>
    %cst_42 = arith.constant dense<0.000000e+00> : vector<8xf32>
    %105 = vector.multi_reduction <add>, %104, %cst_42 [1] : vector<8x16xf32> to vector<8xf32>
    %106 = vector.shape_cast %105 : vector<8xf32> to vector<8x1xf32>
    %cst_43 = arith.constant 1.600000e+01 : f32
    %107 = vector.broadcast %cst_43 : f32 to vector<8x1xf32>
    %108 = arith.divf %106, %107 : vector<8x1xf32>
    %cst_44 = arith.constant 9.99999974E-6 : f32
    %109 = vector.broadcast %cst_44 : f32 to vector<8x1xf32>
    %110 = arith.addf %108, %109 : vector<8x1xf32>
    %111 = math.rsqrt %110 : vector<8x1xf32>
    %112 = vector.broadcast %111 : vector<8x1xf32> to vector<8x16xf32>
    %113 = arith.mulf %103, %112 : vector<8x16xf32>
    %114 = vector.broadcast %96 : vector<1x16xf32> to vector<8x16xf32>
    %115 = arith.mulf %113, %114 : vector<8x16xf32>
    %116 = vector.broadcast %97 : vector<1x16xf32> to vector<8x16xf32>
    %117 = arith.addf %115, %116 : vector<8x16xf32>
    %cst_45 = arith.constant 0.000000e+00 : f32
    %118 = vector.broadcast %cst_45 : f32 to vector<8x16xf32>
    %119 = arith.maximumf %117, %118 : vector<8x16xf32>
    %120 = vector.broadcast %10 : vector<1x16xf32> to vector<8x16xf32>
    %121 = arith.mulf %94, %120 : vector<8x16xf32>
    %cst_46 = arith.constant dense<0.000000e+00> : vector<8xf32>
    %122 = vector.multi_reduction <add>, %121, %cst_46 [1] : vector<8x16xf32> to vector<8xf32>
    %123 = vector.shape_cast %122 : vector<8xf32> to vector<8x1xf32>
    %124 = vector.broadcast %12 : vector<1x1xf32> to vector<8x1xf32>
    %125 = arith.addf %123, %124 : vector<8x1xf32>
    %c0_47 = arith.constant 0 : index
    %c0_48 = arith.constant 0 : index
    %126 = vector.load %arg5[%c0_47, %c0_48] : memref<16x8xf32, #tpu.memory_space<vmem>>, vector<16x8xf32>
    %cst_49 = arith.constant dense<0.000000e+00> : vector<8x8xf32>
    %127 = tpu.matmul %119, %126, %cst_49 {dimension_numbers = #tpu.dot_dimension_numbers<[1], [0], [0], [1], [0, 0, 1, 1], [], []>} : vector<8x16xf32>, vector<16x8xf32>, vector<8x8xf32> -> vector<8x8xf32>
    %128 = vector.broadcast %11 : vector<1x8xf32> to vector<8x8xf32>
    %129 = arith.addf %127, %128 : vector<8x8xf32>
    %cst_50 = arith.constant dense<0.000000e+00> : vector<8xf32>
    %130 = vector.multi_reduction <add>, %129, %cst_50 [1] : vector<8x8xf32> to vector<8xf32>
    %131 = vector.shape_cast %130 : vector<8xf32> to vector<8x1xf32>
    %cst_51 = arith.constant 8.000000e+00 : f32
    %132 = vector.broadcast %cst_51 : f32 to vector<8x1xf32>
    %133 = arith.divf %131, %132 : vector<8x1xf32>
    %134 = vector.broadcast %133 : vector<8x1xf32> to vector<8x8xf32>
    %135 = arith.subf %129, %134 : vector<8x8xf32>
    %136 = vector.broadcast %125 : vector<8x1xf32> to vector<8x8xf32>
    %137 = arith.addf %136, %135 : vector<8x8xf32>
    %c0_52 = arith.constant 0 : index
    %c0_53 = arith.constant 0 : index
    %138 = vector.load %arg7[%c0_52, %c0_53] : memref<8x8xf32, #tpu.memory_space<vmem>>, vector<8x8xf32>
    tpu.vector_store %arg7[%c0_52, %c0_53], %137 {strides = array<i32>} : memref<8x8xf32, #tpu.memory_space<vmem>>, vector<8x8xf32>,
    return
  }
  func.func @transform_0(%arg0: i32) -> (i32, i32) {
    %c0_i32 = arith.constant 0 : i32
    %c0_i32_0 = arith.constant 0 : i32
    return %arg0, %c0_i32 : i32, i32
  }
  func.func @transform_1(%arg0: i32) -> (i32, i32) {
    %c0_i32 = arith.constant 0 : i32
    %c0_i32_0 = arith.constant 0 : i32
    %c0_i32_1 = arith.constant 0 : i32
    return %c0_i32, %c0_i32_0 : i32, i32
  }
  func.func @transform_2(%arg0: i32) -> (i32, i32) {
    %c0_i32 = arith.constant 0 : i32
    %c0_i32_0 = arith.constant 0 : i32
    %c0_i32_1 = arith.constant 0 : i32
    return %c0_i32, %c0_i32_0 : i32, i32
  }
  func.func @transform_3(%arg0: i32) -> (i32, i32) {
    %c0_i32 = arith.constant 0 : i32
    %c0_i32_0 = arith.constant 0 : i32
    %c0_i32_1 = arith.constant 0 : i32
    return %c0_i32, %c0_i32_0 : i32, i32
  }
  func.func @transform_4(%arg0: i32) -> (i32, i32) {
    %c0_i32 = arith.constant 0 : i32
    %c0_i32_0 = arith.constant 0 : i32
    %c0_i32_1 = arith.constant 0 : i32
    return %c0_i32, %c0_i32_0 : i32, i32
  }
  func.func @transform_5(%arg0: i32) -> (i32, i32) {
    %c0_i32 = arith.constant 0 : i32
    %c0_i32_0 = arith.constant 0 : i32
    %c0_i32_1 = arith.constant 0 : i32
    return %c0_i32, %c0_i32_0 : i32, i32
  }
  func.func @transform_6(%arg0: i32) -> (i32, i32) {
    %c0_i32 = arith.constant 0 : i32
    %c0_i32_0 = arith.constant 0 : i32
    return %arg0, %c0_i32 : i32, i32
  }
}

</mosaic_0001>

<bundles_post_ra>
// kernel: tpu_custom_call.1
= control target key start
LH: loop header
LB: loop body
LE: loop exit
PB: predicated region body
PF: predicated region fallthrough
CT: control target
= control target key end

     0   :  { %11 = vsyncpa [#allocation3], 0  ;;  %s606_s0 = inlined_call_operand.vmem [shape: f32[8,16], index: 0, kind: input, shape index: {}]   ;;  %s607_s1 = inlined_call_operand.vmem [shape: f32[16,32], index: 1, kind: input, shape index: {}]   ;;  %s608_s2 = inlined_call_operand.hbm [shape: f32[32,32], index: 2, kind: input, shape index: {}]   ;;  %s609_s3 = inlined_call_operand.hbm [shape: f32[32,32], index: 3, kind: input, shape index: {}]   ;;  %s610_s4 = inlined_call_operand.vmem [shape: f32[16,8], index: 4, kind: input, shape index: {}]   ;;  %s611_s5 = inlined_call_operand.hbm [shape: f32[12,32], index: 5, kind: input, shape index: {}]   ;;  %s612_s6 = inlined_call_operand.hbm [shape: f32[8,8], index: 6, kind: output, shape index: {}]  }
   0x1   :  { %12 = vsyncpa [#allocation6], 0 }
   0x2   :  { %13 = vsyncpa [#allocation4], 0  ;;  %s35_s23 = sshll.u32 %s609_s3, 4  ;;  %s515_s24 = smov [#allocation5]   ;;  %s36_s23 = int_to_ptr.hbm [resolvable:$true] %s35_s23 }
   0x3   :  { %s37_s25 = sshll.u32 %s515_s24, 4  ;;  %s22_s28 = sshll.u32 %s608_s2, 4  ;;  %s38_s25 = int_to_ptr.vmem [resolvable:$true] %s37_s25  ;;  %s23_s28 = int_to_ptr.hbm [resolvable:$true] %s22_s28 }
   0x4   :  { %s516_s29 = smov 128   ;;  %s517_s30 = smov 8  }
   0x5   :  { %43 = dma.hbm_to_vmem [thread:$0]  %s36_s23, 512, %s38_s25, [#allocation6], %s516_s29, %s516_s29, %s517_s30  }
   0x6   :  { %s518_s7 = smov [#allocation2]   ;;  %s50_s11 = sshll.u32 %s611_s5, 4  ;;  %s51_s11 = int_to_ptr.hbm [resolvable:$true] %s50_s11 }
   0x7   :  { %s24_s8 = sshll.u32 %s518_s7, 4  ;;  %s519_s3 = smov [#allocation7]   ;;  %s25_s8 = int_to_ptr.vmem [resolvable:$true] %s24_s8 }
   0x8   :  { %30 = dma.hbm_to_vmem [thread:$0]  %s23_s28, 512, %s25_s8, [#allocation3], %s516_s29, %s516_s29, %s517_s30  }
   0x9   :  { %s52_s12 = sshll.u32 %s519_s3, 4  ;;  %s53_s12 = int_to_ptr.vmem [resolvable:$true] %s52_s12 }
   0xa   :  { %58 = dma.hbm_to_vmem [thread:$0]  %s51_s11, 256, %s53_s12, [#allocation6], %s516_s29, %s516_s29, %s517_s30  }
   0xb   :  { %509 = dma.done.wait [#allocation3], 512  }
   0xc   :  { %510 = vsyncadd [#allocation3], 4294966784 }
   0xd   :  { %511 = dma.done.wait [#allocation6], 768  }
   0xe   :  { %512 = vsyncadd [#allocation6], 4294966528  ;;  %v85_v0 = vld [vmem:[%s607_s1 + $0x8] sm:$0xff]  ;;  %v84_v1 = vld [vmem:[%s607_s1] sm:$0xff]  ;;  %vm87_vm0 = vcmask 130048   ;;  %vm111_vm1 = vcmask 261120  }
   0xf   :  { %105 = vmatpush.msra.mxu0 %v85_v0  ;;  %v71_v2 = vld [vmem:[%s606_s0] sm:$0xff]  ;;  %v520_v7 = vmov 32.0   ;;  %v149_v19 = vld [vmem:[#allocation2 + $0x18] sm:$0xff]  ;;  %v148_v20 = vld [vmem:[#allocation2 + $0x10] sm:$0xff]  ;;  %s521_s0 = smov 112   ;;  %s359_s23 = sshll.u32 %s612_s6, 4  ;;  %s360_s23 = int_to_ptr.hbm [resolvable:$true] %s359_s23 }
  0x10   :  { %v387_v3 = vld [vmem:[#allocation7] ss:$0 sm:$0xff]  ;;  %399 = vrcp.f32 %v520_v7  ;;  %166 = vmatpush.msra.mxu1 %v149_v19  ;;  %v147_v21 = vld [vmem:[#allocation2 + $0x8] sm:$0xff]  ;;  %v388_v32 = vld [vmem:[#allocation7 + $0x1] ss:$0 sm:$0xff] }
  0x11   :  { %106 = vmatpush.msra.mxu0 %v84_v1  ;;  %v146_v22 = vld [vmem:[#allocation2] sm:$0xff]  ;;  %v205_v48 = vld [vmem:[#allocation5 + $0x18] sm:$0xff]  ;;  %v204_v49 = vld [vmem:[#allocation5 + $0x10] sm:$0xff] }
  0x12   :  { %370 = vmatmul.msk.f32.vlgmr.msra.gmra.mxu0 %vm87_vm0, %v71_v2  ;;  %167 = vmatpush.msra.mxu1 %v148_v20  ;;  %v389_v35 = vld [vmem:[#allocation7 + $0x2] ss:$0 sm:$0xff]  ;;  %v390_v39 = vld [vmem:[#allocation7 + $0x3] ss:$0 sm:$0xff]  ;;  %v203_v50 = vld [vmem:[#allocation5 + $0x8] sm:$0xff] }
  0x13   :  { %222 = vmatpush.msra.mxu2 %v205_v48  ;;  %v202_v51 = vld [vmem:[#allocation5] sm:$0xff] }
  0x14   :  { %168 = vmatpush.msra.mxu1 %v147_v21  ;;  %v391_v61 = vld [vmem:[#allocation7 + $0x4] ss:$0 sm:$0xff]  ;;  %v392_v0 = vld [vmem:[#allocation7 + $0x5] ss:$0 sm:$0xff] }
  0x15   :  { %223 = vmatpush.msra.mxu2 %v204_v49 }
  0x16   :  { %v400_v8 = vpop.eup %399  ;;  %169 = vmatpush.msra.mxu1 %v146_v22 }
  0x17   :  { %v116_v9 = vmul.f32 32.0, %v400_v8  ;;  %vm120_vm2 = vweird.f32 %v400_v8  ;;  %224 = vmatpush.msra.mxu2 %v203_v50 }
  0x19   :  { %v117_v10 = vsub.f32 1.0, %v116_v9  ;;  %225 = vmatpush.msra.mxu2 %v202_v51 }
  0x1b   :  { %v118_v11 = vmul.f32 %v400_v8, %v117_v10  ;;  %v522_v10 = vmov 16.0  }
  0x1d   :  { %v119_v12 = vadd.f32 %v400_v8, %v118_v11 }
  0x1f   :  { %v121_v13 = vsel %vm120_vm2, %v400_v8, %v119_v12 }
  0x8f   :  { %v108_v4 = vpop.f32.mrf.mxu0 }
  0x90   :  { %v109_v5 = vadd.f32 %v387_v3, %v108_v4 }
  0x92   :  { %v112_v6 = vsel %vm111_vm1, %v109_v5, 0.0 }
  0x93   :  { %113 = vadd.xlane.f32.xlu0 %v112_v6 }
 0x106   :  { %v114_v14 = vpop.xlane.xlu0 %113 }
 0x107   :  { %v122_v15 = vmul.f32 %v121_v13, %v114_v14 }
 0x109   :  { %v123_v16 = vsub.f32 %v109_v5, %v122_v15  ;;  %v393_v5 = vld [vmem:[#allocation7 + $0x6] ss:$0 sm:$0xff] }
 0x10b   :  { %v124_v17 = vmul.f32 %v123_v16, %v123_v16 }
 0x10d   :  { %v125_v18 = vsel %vm111_vm1, %v124_v17, 0.0 }
 0x10e   :  { %126 = vadd.xlane.f32.xlu0 %v125_v18 }
 0x181   :  { %v127_v23 = vpop.xlane.xlu0 %126 }
 0x182   :  { %v128_v24 = vmul.f32 %v127_v23, %v121_v13 }
 0x184   :  { %v129_v25 = vadd.f32 1e-05, %v128_v24 }
 0x186   :  { %401 = vrsqrt.f32 %v129_v25  ;;  %vm136_vm4 = vweird.f32 %v129_v25 }
 0x18c   :  { %v402_v26 = vpop.eup %401 }
 0x18d   :  { %v131_v27 = vmul.f32 %v402_v26, %v129_v25  ;;  %vm137_vm3 = vweird.f32 %v402_v26 }
 0x18e   :  { %vm138_vm5 = vmor %vm136_vm4, %vm137_vm3 }
 0x18f   :  { %v132_v28 = vmul.f32 %v402_v26, %v131_v27 }
 0x191   :  { %v133_v29 = vmul.f32 0.5, %v132_v28 }
 0x193   :  { %v134_v30 = vsub.f32 1.5, %v133_v29 }
 0x195   :  { %v135_v31 = vmul.f32 %v402_v26, %v134_v30 }
 0x197   :  { %v139_v33 = vsel %vm138_vm5, %v402_v26, %v135_v31 }
 0x198   :  { %v140_v34 = vmul.f32 %v139_v33, %v123_v16  ;;  %v394_v33 = vld [vmem:[#allocation7 + $0x7] ss:$0 sm:$0xff] }
 0x19a   :  { %v142_v36 = vmul.f32 %v388_v32, %v140_v34 }
 0x19c   :  { %v144_v37 = vadd.f32 %v389_v35, %v142_v36  ;;  %v395_v35 = vld [vmem:[#allocation7 + $0x8] ss:$0 sm:$0xff] }
 0x19e   :  { %v145_v38 = vmax.f32 %v144_v37, 0.0 }
 0x1a0   :  { %371 = vmatmul.msk.f32.vlgmr.msra.gmra.mxu1 %vm111_vm1, %v145_v38 }
 0x21d   :  { %v171_v40 = vpop.f32.mrf.mxu1 }
 0x21e   :  { %v172_v41 = vadd.f32 %v390_v39, %v171_v40  ;;  %v305_v40 = vld [vmem:[%s610_s4 + $0x8] sm:$0xff] }
 0x21f   :  { %326 = vmatpush.msra.mxu3 %v305_v40 }
 0x220   :  { %v174_v42 = vsel %vm111_vm1, %v172_v41, 0.0 }
 0x221   :  { %175 = vadd.xlane.f32.xlu1 %v174_v42 }
 0x294   :  { %v176_v43 = vpop.xlane.xlu1 %175 }
 0x295   :  { %v177_v44 = vmul.f32 %v176_v43, %v121_v13 }
 0x297   :  { %v178_v45 = vsub.f32 %v172_v41, %v177_v44  ;;  %v304_v41 = vld [vmem:[%s610_s4] sm:$0xff]  ;;  %s525_s4 = smov [#allocation8]  }
 0x298   :  { %327 = vmatpush.msra.mxu3 %v304_v41  ;;  %s357_s20 = sshll.u32 %s525_s4, 4  ;;  %s358_s20 = int_to_ptr.vmem [resolvable:$true] %s357_s20 }
 0x299   :  { %v179_v46 = vmul.f32 %v178_v45, %v178_v45 }
 0x29b   :  { %v180_v47 = vsel %vm111_vm1, %v179_v46, 0.0 }
 0x29c   :  { %181 = vadd.xlane.f32.xlu1 %v180_v47 }
 0x30f   :  { %v182_v52 = vpop.xlane.xlu1 %181 }
 0x310   :  { %v183_v53 = vmul.f32 %v182_v52, %v121_v13 }
 0x312   :  { %v184_v54 = vadd.f32 1e-05, %v183_v53 }
 0x314   :  { %403 = vrsqrt.f32 %v184_v54  ;;  %vm191_vm7 = vweird.f32 %v184_v54 }
 0x315   :  { %405 = vrcp.f32 %v522_v10 }
 0x31a   :  { %v404_v55 = vpop.eup %403 }
 0x31b   :  { %v186_v56 = vmul.f32 %v404_v55, %v184_v54  ;;  %vm192_vm6 = vweird.f32 %v404_v55  ;;  %v406_v11 = vpop.eup %405 }
 0x31c   :  { %vm193_vm8 = vmor %vm191_vm7, %vm192_vm6  ;;  %v234_v12 = vmul.f32 16.0, %v406_v11  ;;  %vm238_vm9 = vweird.f32 %v406_v11 }
 0x31d   :  { %v187_v57 = vmul.f32 %v404_v55, %v186_v56 }
 0x31e   :  { %v235_v13 = vsub.f32 1.0, %v234_v12 }
 0x31f   :  { %v188_v58 = vmul.f32 0.5, %v187_v57 }
 0x320   :  { %v236_v14 = vmul.f32 %v406_v11, %v235_v13 }
 0x321   :  { %v189_v59 = vsub.f32 1.5, %v188_v58 }
 0x322   :  { %v237_v15 = vadd.f32 %v406_v11, %v236_v14 }
 0x323   :  { %v190_v60 = vmul.f32 %v404_v55, %v189_v59 }
 0x324   :  { %v239_v16 = vsel %vm238_vm9, %v406_v11, %v237_v15 }
 0x325   :  { %v194_v62 = vsel %vm193_vm8, %v404_v55, %v190_v60 }
 0x326   :  { %v195_v63 = vmul.f32 %v194_v62, %v178_v45 }
 0x328   :  { %v197_v1 = vmul.f32 %v391_v61, %v195_v63  ;;  %v396_v61 = vld [vmem:[#allocation7 + $0x9] ss:$0 sm:$0xff] }
 0x32a   :  { %v199_v2 = vadd.f32 %v392_v0, %v197_v1  ;;  %v397_v1 = vld [vmem:[#allocation7 + $0xa] ss:$0 sm:$0xff] }
 0x32c   :  { %v200_v3 = vmax.f32 %v199_v2, 0.0 }
 0x32e   :  { %v201_v4 = vadd.f32 %v200_v3, %v145_v38 }
 0x330   :  { %372 = vmatmul.msk.f32.vlgmr.msra.gmra.mxu2 %vm111_vm1, %v201_v4  ;;  %vm332_vm1 = vcmask 64512  }
 0x3b3   :  { %v227_v6 = vpop.f32.mrf.mxu2 }
 0x3b4   :  { %v228_v7 = vadd.f32 %v393_v5, %v227_v6  ;;  %v523_v5 = vmov 0   ;;  %v398_v6 = vld [vmem:[#allocation7 + $0xb] ss:$0 sm:$0xff] }
 0x3b5   :  { %385 = vset.pattern.permute.xlu2 %v523_v5  ;;  %386 = vset.pattern.permute.xlu0 %v523_v5 }
 0x3b6   :  { %265 = vrot.lane.b32.xlu2 %v228_v7, %s521_s0  ;;  %v230_v21 = vsel %vm87_vm0, %v228_v7, 0.0 }
 0x410   :  { %v266_v8 = vpop.permute.xlu2 %265 }
 0x411   :  { %v268_v9 = vsel %vm87_vm0, %v266_v8, 0.0 }
 0x412   :  { %269 = vadd.xlane.f32.xlu2 %v268_v9  ;;  %v524_v9 = vmov 8.0  }
 0x485   :  { %v270_v17 = vpop.xlane.xlu2 %269 }
 0x486   :  { %v271_v18 = vmul.f32 %v270_v17, %v239_v16 }
 0x488   :  { %v272_v19 = vsub.f32 %v228_v7, %v271_v18 }
 0x48a   :  { %v273_v20 = vmul.f32 %v272_v19, %v272_v19 }
 0x48c   :  { %275 = vrot.lane.b32.xlu0 %v273_v20, %s521_s0 }
 0x4b6   :  { %231 = vadd.xlane.f32.xlu0 %v230_v21 }
 0x4fe   :  { %v276_v22 = vpop.permute.xlu0 %275 }
 0x4ff   :  { %v278_v23 = vsel %vm87_vm0, %v276_v22, 0.0 }
 0x500   :  { %279 = vadd.xlane.f32.xlu1 %v278_v23 }
 0x529   :  { %v232_v42 = vpop.xlane.xlu0 %231 }
 0x52a   :  { %v240_v43 = vmul.f32 %v239_v16, %v232_v42 }
 0x52c   :  { %v241_v44 = vsub.f32 %v228_v7, %v240_v43 }
 0x52e   :  { %v242_v45 = vmul.f32 %v241_v44, %v241_v44 }
 0x530   :  { %v243_v46 = vsel %vm87_vm0, %v242_v45, 0.0 }
 0x573   :  { %v280_v24 = vpop.xlane.xlu1 %279 }
 0x574   :  { %v281_v25 = vmul.f32 %v280_v24, %v239_v16 }
 0x576   :  { %v282_v26 = vadd.f32 1e-05, %v281_v25 }
 0x578   :  { %407 = vrsqrt.f32 %v282_v26  ;;  %vm289_vm11 = vweird.f32 %v282_v26 }
 0x57e   :  { %v408_v27 = vpop.eup %407 }
 0x57f   :  { %v284_v28 = vmul.f32 %v408_v27, %v282_v26  ;;  %vm290_vm10 = vweird.f32 %v408_v27 }
 0x580   :  { %vm291_vm12 = vmor %vm289_vm11, %vm290_vm10 }
 0x581   :  { %v285_v29 = vmul.f32 %v408_v27, %v284_v28 }
 0x583   :  { %v286_v30 = vmul.f32 0.5, %v285_v29 }
 0x585   :  { %v287_v31 = vsub.f32 1.5, %v286_v30 }
 0x587   :  { %v288_v32 = vmul.f32 %v408_v27, %v287_v31 }
 0x589   :  { %v292_v34 = vsel %vm291_vm12, %v408_v27, %v288_v32 }
 0x58a   :  { %v293_v36 = vmul.f32 %v292_v34, %v272_v19 }
 0x58c   :  { %v294_v37 = vmul.f32 %v394_v33, %v293_v36 }
 0x58e   :  { %v295_v38 = vadd.f32 %v395_v35, %v294_v37 }
 0x590   :  { %v296_v39 = vmax.f32 %v295_v38, 0.0 }
 0x592   :  { %308 = vrot.lane.b32.xlu1 %v296_v39, %s521_s0 }
 0x5bc   :  { %244 = vadd.xlane.f32.xlu1 %v243_v46 }
 0x604   :  { %v309_v47 = vpop.permute.xlu1 %308 }
 0x605   :  { %373 = vmatmul.msk.f32.vlgmr.msra.gmra.mxu3 %vm87_vm0, %v309_v47 }
 0x62f   :  { %v245_v48 = vpop.xlane.xlu1 %244 }
 0x630   :  { %v246_v49 = vmul.f32 %v245_v48, %v239_v16 }
 0x632   :  { %v247_v50 = vadd.f32 1e-05, %v246_v49 }
 0x634   :  { %409 = vrsqrt.f32 %v247_v50  ;;  %vm254_vm14 = vweird.f32 %v247_v50 }
 0x635   :  { %411 = vrcp.f32 %v524_v9 }
 0x63a   :  { %v410_v51 = vpop.eup %409 }
 0x63b   :  { %v249_v52 = vmul.f32 %v410_v51, %v247_v50  ;;  %vm255_vm13 = vweird.f32 %v410_v51  ;;  %v412_v10 = vpop.eup %411 }
 0x63c   :  { %vm256_vm15 = vmor %vm254_vm14, %vm255_vm13  ;;  %v337_v11 = vmul.f32 8.0, %v412_v10 }
 0x63d   :  { %v250_v53 = vmul.f32 %v410_v51, %v249_v52 }
 0x63e   :  { %v338_v12 = vsub.f32 1.0, %v337_v11 }
 0x63f   :  { %v251_v54 = vmul.f32 0.5, %v250_v53 }
 0x640   :  { %v339_v13 = vmul.f32 %v412_v10, %v338_v12 }
 0x641   :  { %v252_v55 = vsub.f32 1.5, %v251_v54 }
 0x642   :  { %v340_v14 = vadd.f32 %v412_v10, %v339_v13 }
 0x643   :  { %v253_v56 = vmul.f32 %v410_v51, %v252_v55 }
 0x645   :  { %v257_v57 = vsel %vm256_vm15, %v410_v51, %v253_v56 }
 0x646   :  { %v258_v58 = vmul.f32 %v257_v57, %v241_v44 }
 0x648   :  { %v260_v59 = vmul.f32 %v394_v33, %v258_v58 }
 0x64a   :  { %v262_v60 = vadd.f32 %v395_v35, %v260_v59 }
 0x64c   :  { %v263_v62 = vmax.f32 %v262_v60, 0.0 }
 0x64e   :  { %v298_v63 = vmul.f32 %v396_v61, %v263_v62 }
 0x650   :  { %v299_v0 = vsel %vm87_vm0, %v298_v63, 0.0  ;;  %vm341_vm0 = vweird.f32 %v412_v10 }
 0x651   :  { %300 = vadd.xlane.f32.xlu2 %v299_v0  ;;  %v342_v15 = vsel %vm341_vm0, %v412_v10, %v340_v14 }
 0x688   :  { %v329_v2 = vpop.f32.mrf.mxu3 }
 0x689   :  { %v330_v3 = vadd.f32 %v397_v1, %v329_v2 }
 0x68b   :  { %v333_v4 = vsel %vm332_vm1, %v330_v3, 0.0 }
 0x68c   :  { %334 = vadd.xlane.f32.xlu2 %v333_v4 }
 0x6c4   :  { %v301_v7 = vpop.xlane.xlu2 %300 }
 0x6c5   :  { %v303_v8 = vadd.f32 %v398_v6, %v301_v7 }
 0x6c7   :  { %347 = vperm.xlu2 %385, %v303_v8  }
 0x6ff   :  { %v335_v16 = vpop.xlane.xlu2 %334 }
 0x700   :  { %v343_v17 = vmul.f32 %v342_v15, %v335_v16 }
 0x702   :  { %v344_v18 = vsub.f32 %v330_v3, %v343_v17 }
 0x721   :  { %v348_v19 = vpop.permute.xlu2 %347 }
 0x722   :  { %v350_v20 = vadd.f32 %v348_v19, %v344_v18 }
 0x724   :  { %351 = vst.msk [vmem:[#allocation8] sm:$0xff] %vm332_vm1, %v350_v20 }
 0x725   :  { %362 = dma.vmem_to_hbm [thread:$0]  %s358_s20, 128, %s360_s23, [#allocation4]  }
 0x726   :  { %513 = dma.done.wait [#allocation4], 128  }
 0x727   :  { %514 = vsyncadd [#allocation4], 4294967168 }
 0x728   :  { %367 = vsyncpa [#allocation3], 1 }
 0x729   :  { %368 = vsyncpa [#allocation6], 1 }
 0x72a   :  { %369 = vsyncpa [#allocation4], 1 }

</bundles_post_ra>
